<compile_context>
chip_gen: v5e
topology: v5e:2x2
jax: 0.10.0
libtpu: 0.0.40
codegen_flags: <defaults>
</compile_context>

<pallas_src>
import functools

import jax
import jax.numpy as jnp
from jax.experimental import pallas as pl
from jax.experimental.pallas import tpu as pltpu

IN_SIZE = 5       # module input_size
OUT_SIZE = 4      # module output_size (number_of_actions)
IN_PAD = 8        # input features padded to one f32 sublane tile
OUT_PAD = 8       # output padded to 8 lanes (full-dim block, masked stores)
HID_PAD = 128     # hidden width padded to one lane tile
SUB = 8           # sublane granularity for the batch axis
TB_MAX = 256      # batch rows per grid step ((TB,128) f32 activation = 32 vregs)


def _round_up(n, m):
    return ((n + m - 1) // m) * m


def _pad2(a, rows, cols, dtype=jnp.float32):
    a = a.astype(dtype)
    r, c = a.shape
    return jnp.pad(a, ((0, rows - r), (0, cols - c)))


def prepare_params(params, num_layers):
    """Pad + cast parameters once. Do NOT call this per forward step."""
    w_in, b_in, w_h, b_h, w_out, b_out = params
    w_in_p = _pad2(w_in, IN_PAD, HID_PAD)
    b_in_p = _pad2(b_in[None, :], 1, HID_PAD)
    w_out_p = _pad2(w_out, HID_PAD, OUT_PAD)
    b_out_p = _pad2(b_out[None, :], 1, OUT_PAD)
    if num_layers == 0:
        return (w_in_p, b_in_p, w_out_p, b_out_p)
    w_h_p = jnp.stack([_pad2(w_h[i], HID_PAD, HID_PAD, jnp.bfloat16)
                       for i in range(num_layers)])
    b_h_p = jnp.stack([_pad2(b_h[i][None, :], 1, HID_PAD)
                       for i in range(num_layers)])
    return (w_in_p, b_in_p, w_h_p, b_h_p, w_out_p, b_out_p)


def _mlp_kernel(num_layers, *refs):
    if num_layers > 0:
        (x_ref, w_in_ref, b_in_ref, w_h_ref, b_h_ref,
         w_out_ref, b_out_ref, o_ref) = refs
    else:
        x_ref, w_in_ref, b_in_ref, w_out_ref, b_out_ref, o_ref = refs
        w_h_ref = b_h_ref = None

    # Layer 0: Linear(in -> hidden) + ReLU  (tiny K, f32)
    h = jnp.dot(x_ref[...], w_in_ref[...], preferred_element_type=jnp.float32)
    h = jnp.maximum(h + b_in_ref[...], 0.0)

    # Hidden layers (static unroll): bf16 weights, f32 accumulation
    for i in range(num_layers):
        h = jnp.dot(h.astype(jnp.bfloat16), w_h_ref[i],
                    preferred_element_type=jnp.float32)
        h = jnp.maximum(h + b_h_ref[i], 0.0)

    # Output layer: Linear(hidden -> out), no activation
    o = jnp.dot(h, w_out_ref[...], preferred_element_type=jnp.float32)
    o_ref[...] = o + b_out_ref[...]


@functools.partial(jax.jit, static_argnames=("num_layers", "tb"))
def _mlp_forward_padded(x, prepared, num_layers, tb):
    B = x.shape[0]
    Bp = _round_up(B, tb)
    x_p = jnp.pad(x.astype(jnp.float32),
                  ((0, Bp - B), (0, IN_PAD - x.shape[1])))

    const2 = lambda i: (0, 0)   # weights/biases: same block every grid step
    const3 = lambda i: (0, 0, 0)

    in_specs = [pl.BlockSpec((tb, IN_PAD), lambda i: (i, 0))]
    args = [x_p]
    if num_layers > 0:
        w_in_p, b_in_p, w_h_p, b_h_p, w_out_p, b_out_p = prepared
        in_specs += [pl.BlockSpec(w_in_p.shape, const2),
                     pl.BlockSpec(b_in_p.shape, const2),
                     pl.BlockSpec(w_h_p.shape, const3),
                     pl.BlockSpec(b_h_p.shape, const3),
                     pl.BlockSpec(w_out_p.shape, const2),
                     pl.BlockSpec(b_out_p.shape, const2)]
        args += [w_in_p, b_in_p, w_h_p, b_h_p, w_out_p, b_out_p]
    else:
        w_in_p, b_in_p, w_out_p, b_out_p = prepared
        in_specs += [pl.BlockSpec(w_in_p.shape, const2),
                     pl.BlockSpec(b_in_p.shape, const2),
                     pl.BlockSpec(w_out_p.shape, const2),
                     pl.BlockSpec(b_out_p.shape, const2)]
        args += [w_in_p, b_in_p, w_out_p, b_out_p]

    out = pl.pallas_call(
        functools.partial(_mlp_kernel, num_layers),
        out_shape=jax.ShapeDtypeStruct((Bp, OUT_PAD), jnp.float32),
        grid=(Bp // tb,),
        in_specs=in_specs,
        out_specs=pl.BlockSpec((tb, OUT_PAD), lambda i: (i, 0)),
        compiler_params=pltpu.CompilerParams(
            dimension_semantics=("parallel",),
            vmem_limit_bytes=32 * 1024 * 1024),
    )(*args)
    return out[:B, :OUT_SIZE]


def mlp_forward(x, prepared, num_layers):
    """x: (B, 5) float32, prepared = prepare_params(...). Returns (B, 4) f32."""
    B = x.shape[0]
    tb = min(TB_MAX, _round_up(B, SUB))
    return _mlp_forward_padded(x, prepared, num_layers=num_layers, tb=tb)


def init_params(key, input_size=IN_SIZE, hidden_size=12, output_size=OUT_SIZE,
                num_layers=1):
    """Deterministic init mimicking nn.Linear's U(-1/sqrt(fan_in), 1/sqrt(fan_in)).
    Weights are stored as (in, out) so the kernel computes x @ W + b."""
    keys = jax.random.split(key, 2 * (num_layers + 2))

    def lin(kw, kb, fan_in, fan_out):
        bound = 1.0 / jnp.sqrt(fan_in)
        w = jax.random.uniform(kw, (fan_in, fan_out), jnp.float32, -bound, bound)
        b = jax.random.uniform(kb, (fan_out,), jnp.float32, -bound, bound)
        return w, b

    w_in, b_in = lin(keys[0], keys[1], input_size, hidden_size)
    w_h_list, b_h_list = [], []
    for i in range(num_layers):
        w, b = lin(keys[2 + 2 * i], keys[3 + 2 * i], hidden_size, hidden_size)
        w_h_list.append(w)
        b_h_list.append(b)
    w_out, b_out = lin(keys[-2], keys[-1], hidden_size, output_size)
    if num_layers > 0:
        w_h = jnp.stack(w_h_list)
        b_h = jnp.stack(b_h_list)
    else:
        w_h = jnp.zeros((0, hidden_size, hidden_size), jnp.float32)
        b_h = jnp.zeros((0, hidden_size), jnp.float32)
    return (w_in, b_in, w_h, b_h, w_out, b_out)


def reference_forward(x, params, num_layers):
    w_in, b_in, w_h, b_h, w_out, b_out = params
    h = jnp.maximum(x @ w_in + b_in, 0.0)
    for i in range(num_layers):
        h = jnp.maximum(h @ w_h[i] + b_h[i], 0.0)
    return h @ w_out + b_out


if __name__ == "__main__":
    key = jax.random.PRNGKey(0)

    tests = [
        dict(num_layers=1, hidden=12, batch=8),     # module defaults, small batch
        dict(num_layers=2, hidden=12, batch=300),   # multi-step grid + row padding
        dict(num_layers=0, hidden=12, batch=5),     # no hidden layers path
    ]
    for cfg in tests:
        k_param, k_x, key = jax.random.split(key, 3)
        num_layers = cfg["num_layers"]
        params = init_params(k_param, IN_SIZE, cfg["hidden"], OUT_SIZE, num_layers)
        prepared = prepare_params(params, num_layers)   # one-time pad/cast
        x = jax.random.normal(k_x, (cfg["batch"], IN_SIZE), dtype=jnp.float32)

        out = mlp_forward(x, prepared, num_layers)
        out = jax.block_until_ready(out)
        ref = reference_forward(x, params, num_layers)

        assert out.shape == (cfg["batch"], OUT_SIZE)
        # bf16 hidden weights in the kernel -> compare to f32 reference with a
        # tolerance comfortably above bf16 rounding but well below signal scale.
        max_diff = float(jnp.max(jnp.abs(out - ref)))
        assert jnp.allclose(out, ref, atol=3e-2, rtol=3e-2), (
            f"mismatch vs reference for cfg={cfg}: max abs diff {max_diff}")

    print("KERNEL_OK")
</pallas_src>

<mosaic_0001>
module attributes {stable_mosaic.version = 11 : i64} {
  func.func @_mlp_kernel(%arg0: i32, %arg1: memref<8x8xf32, #tpu.memory_space<vmem>>, %arg2: memref<8x128xf32, #tpu.memory_space<vmem>>, %arg3: memref<1x128xf32, #tpu.memory_space<vmem>>, %arg4: memref<1x128x128xbf16, #tpu.memory_space<vmem>>, %arg5: memref<1x1x128xf32, #tpu.memory_space<vmem>>, %arg6: memref<128x8xf32, #tpu.memory_space<vmem>>, %arg7: memref<1x8xf32, #tpu.memory_space<vmem>>, %arg8: memref<8x8xf32, #tpu.memory_space<vmem>>) attributes {dimension_semantics = [#tpu.dimension_semantics<parallel>], iteration_bounds = array<i64: 1>, scalar_prefetch = 0 : i64, scratch_operands = 0 : i64, tpu.core_type = #tpu.core_type<tc>, window_params = [{transform_indices = @transform_0, window_bounds = array<i64: 8, 8>}, {pipeline_mode = #tpu.pipeline_mode<synchronous>, transform_indices = @transform_1, window_bounds = array<i64: 8, 128>}, {pipeline_mode = #tpu.pipeline_mode<synchronous>, transform_indices = @transform_2, window_bounds = array<i64: 1, 128>}, {pipeline_mode = #tpu.pipeline_mode<synchronous>, transform_indices = @transform_3, window_bounds = array<i64: 1, 128, 128>}, {pipeline_mode = #tpu.pipeline_mode<synchronous>, transform_indices = @transform_4, window_bounds = array<i64: 1, 1, 128>}, {pipeline_mode = #tpu.pipeline_mode<synchronous>, transform_indices = @transform_5, window_bounds = array<i64: 128, 8>}, {pipeline_mode = #tpu.pipeline_mode<synchronous>, transform_indices = @transform_6, window_bounds = array<i64: 1, 8>}, {transform_indices = @transform_7, window_bounds = array<i64: 8, 8>}]} {
    %c0 = arith.constant 0 : index
    %c0_0 = arith.constant 0 : index
    %0 = vector.load %arg1[%c0, %c0_0] : memref<8x8xf32, #tpu.memory_space<vmem>>, vector<8x8xf32>
    %c0_1 = arith.constant 0 : index
    %c0_2 = arith.constant 0 : index
    %1 = vector.load %arg2[%c0_1, %c0_2] : memref<8x128xf32, #tpu.memory_space<vmem>>, vector<8x128xf32>
    %cst = arith.constant dense<0.000000e+00> : vector<8x128xf32>
    %2 = tpu.matmul %0, %1, %cst {dimension_numbers = #tpu.dot_dimension_numbers<[1], [0], [0], [1], [0, 0, 1, 1], [], []>} : vector<8x8xf32>, vector<8x128xf32>, vector<8x128xf32> -> vector<8x128xf32>
    %c0_3 = arith.constant 0 : index
    %c0_4 = arith.constant 0 : index
    %3 = vector.load %arg3[%c0_3, %c0_4] : memref<1x128xf32, #tpu.memory_space<vmem>>, vector<1x128xf32>
    %4 = vector.broadcast %3 : vector<1x128xf32> to vector<8x128xf32>
    %5 = arith.addf %2, %4 : vector<8x128xf32>
    %cst_5 = arith.constant 0.000000e+00 : f32
    %6 = vector.broadcast %cst_5 : f32 to vector<8x128xf32>
    %7 = arith.maximumf %5, %6 : vector<8x128xf32>
    %8 = arith.truncf %7 : vector<8x128xf32> to vector<8x128xbf16>
    %c0_6 = arith.constant 0 : index
    %c0_7 = arith.constant 0 : index
    %c0_8 = arith.constant 0 : index
    %9 = vector.load %arg4[%c0_6, %c0_7, %c0_8] : memref<1x128x128xbf16, #tpu.memory_space<vmem>>, vector<1x128x128xbf16>
    %10 = vector.shape_cast %9 : vector<1x128x128xbf16> to vector<128x128xbf16>
    %cst_9 = arith.constant dense<0.000000e+00> : vector<8x128xf32>
    %11 = tpu.matmul %8, %10, %cst_9 {dimension_numbers = #tpu.dot_dimension_numbers<[1], [0], [0], [1], [0, 0, 1, 1], [], []>} : vector<8x128xbf16>, vector<128x128xbf16>, vector<8x128xf32> -> vector<8x128xf32>
    %c0_10 = arith.constant 0 : index
    %c0_11 = arith.constant 0 : index
    %c0_12 = arith.constant 0 : index
    %12 = vector.load %arg5[%c0_10, %c0_11, %c0_12] : memref<1x1x128xf32, #tpu.memory_space<vmem>>, vector<1x1x128xf32>
    %13 = vector.shape_cast %12 : vector<1x1x128xf32> to vector<1x128xf32>
    %14 = vector.broadcast %13 : vector<1x128xf32> to vector<8x128xf32>
    %15 = arith.addf %11, %14 : vector<8x128xf32>
    %cst_13 = arith.constant 0.000000e+00 : f32
    %16 = vector.broadcast %cst_13 : f32 to vector<8x128xf32>
    %17 = arith.maximumf %15, %16 : vector<8x128xf32>
    %c0_14 = arith.constant 0 : index
    %c0_15 = arith.constant 0 : index
    %18 = vector.load %arg6[%c0_14, %c0_15] : memref<128x8xf32, #tpu.memory_space<vmem>>, vector<128x8xf32>
    %cst_16 = arith.constant dense<0.000000e+00> : vector<8x8xf32>
    %19 = tpu.matmul %17, %18, %cst_16 {dimension_numbers = #tpu.dot_dimension_numbers<[1], [0], [0], [1], [0, 0, 1, 1], [], []>} : vector<8x128xf32>, vector<128x8xf32>, vector<8x8xf32> -> vector<8x8xf32>
    %c0_17 = arith.constant 0 : index
    %c0_18 = arith.constant 0 : index
    %20 = vector.load %arg7[%c0_17, %c0_18] : memref<1x8xf32, #tpu.memory_space<vmem>>, vector<1x8xf32>
    %21 = vector.broadcast %20 : vector<1x8xf32> to vector<8x8xf32>
    %22 = arith.addf %19, %21 : vector<8x8xf32>
    %c0_19 = arith.constant 0 : index
    %c0_20 = arith.constant 0 : index
    %23 = vector.load %arg8[%c0_19, %c0_20] : memref<8x8xf32, #tpu.memory_space<vmem>>, vector<8x8xf32>
    tpu.vector_store %arg8[%c0_19, %c0_20], %22 {strides = array<i32>} : memref<8x8xf32, #tpu.memory_space<vmem>>, vector<8x8xf32>,
    return
  }
  func.func @transform_0(%arg0: i32) -> (i32, i32) {
    %c0_i32 = arith.constant 0 : i32
    %c0_i32_0 = arith.constant 0 : i32
    return %arg0, %c0_i32 : i32, i32
  }
  func.func @transform_1(%arg0: i32) -> (i32, i32) {
    %c0_i32 = arith.constant 0 : i32
    %c0_i32_0 = arith.constant 0 : i32
    %c0_i32_1 = arith.constant 0 : i32
    return %c0_i32, %c0_i32_0 : i32, i32
  }
  func.func @transform_2(%arg0: i32) -> (i32, i32) {
    %c0_i32 = arith.constant 0 : i32
    %c0_i32_0 = arith.constant 0 : i32
    %c0_i32_1 = arith.constant 0 : i32
    return %c0_i32, %c0_i32_0 : i32, i32
  }
  func.func @transform_3(%arg0: i32) -> (i32, i32, i32) {
    %c0_i32 = arith.constant 0 : i32
    %c0_i32_0 = arith.constant 0 : i32
    %c0_i32_1 = arith.constant 0 : i32
    %c0_i32_2 = arith.constant 0 : i32
    return %c0_i32, %c0_i32_0, %c0_i32_1 : i32, i32, i32
  }
  func.func @transform_4(%arg0: i32) -> (i32, i32, i32) {
    %c0_i32 = arith.constant 0 : i32
    %c0_i32_0 = arith.constant 0 : i32
    %c0_i32_1 = arith.constant 0 : i32
    %c0_i32_2 = arith.constant 0 : i32
    return %c0_i32, %c0_i32_0, %c0_i32_1 : i32, i32, i32
  }
  func.func @transform_5(%arg0: i32) -> (i32, i32) {
    %c0_i32 = arith.constant 0 : i32
    %c0_i32_0 = arith.constant 0 : i32
    %c0_i32_1 = arith.constant 0 : i32
    return %c0_i32, %c0_i32_0 : i32, i32
  }
  func.func @transform_6(%arg0: i32) -> (i32, i32) {
    %c0_i32 = arith.constant 0 : i32
    %c0_i32_0 = arith.constant 0 : i32
    %c0_i32_1 = arith.constant 0 : i32
    return %c0_i32, %c0_i32_0 : i32, i32
  }
  func.func @transform_7(%arg0: i32) -> (i32, i32) {
    %c0_i32 = arith.constant 0 : i32
    %c0_i32_0 = arith.constant 0 : i32
    return %arg0, %c0_i32 : i32, i32
  }
}

</mosaic_0001>

<bundles_post_ra>
// kernel: _mlp_forward_padded.1
= control target key start
LH: loop header
LB: loop body
LE: loop exit
PB: predicated region body
PF: predicated region fallthrough
CT: control target
= control target key end

     0   :  { %vm32_vm0 = vcmask 64512   ;;  %s361_s1 = inlined_call_operand.vmem [shape: f32[8,128], index: 1, kind: input, shape index: {}]   ;;  %s362_s0 = inlined_call_operand.vmem [shape: f32[8,8], index: 0, kind: input, shape index: {}]   ;;  %s363_s3 = inlined_call_operand.vmem [shape: bf16[1,128,128], index: 3, kind: input, shape index: {}]   ;;  %s364_s2 = inlined_call_operand.vmem [shape: f32[1,128], index: 2, kind: input, shape index: {}]   ;;  %s365_s4 = inlined_call_operand.vmem [shape: f32[1,1,128], index: 4, kind: input, shape index: {}]   ;;  %s366_s5 = inlined_call_operand.vmem [shape: f32[128,8], index: 5, kind: input, shape index: {}]   ;;  %s367_s6 = inlined_call_operand.vmem [shape: f32[1,8], index: 6, kind: input, shape index: {}]   ;;  %s368_s7 = inlined_call_operand.vmem [shape: f32[8,8], index: 7, kind: output, shape index: {}]  }
   0x1   :  { %v27_v0 = vld [vmem:[%s361_s1] sm:$0xff]  ;;  %v225_v2 = vld [vmem:[%s363_s3 + $0x38] sm:$0xff]  ;;  %v224_v3 = vld [vmem:[%s363_s3 + $0x30] sm:$0xff] }
   0x2   :  { %v26_v1 = vld [vmem:[%s362_s0] sm:$0xff]  ;;  %51 = vmatpush.msra.mxu0 %v27_v0  ;;  %126 = vmatpush.bf16.msra.mxu1 %v225_v2  ;;  %v223_v4 = vld [vmem:[%s363_s3 + $0x28] sm:$0xff]  ;;  %v221_v6 = vld [vmem:[%s363_s3 + $0x18] sm:$0xff] }
   0x3   :  { %185 = vmatmul.msk.f32.vlgmr.msra.gmra.mxu0 %vm32_vm0, %v26_v1  ;;  %v222_v5 = vld [vmem:[%s363_s3 + $0x20] sm:$0xff]  ;;  %v220_v7 = vld [vmem:[%s363_s3 + $0x10] sm:$0xff]  ;;  %v219_v8 = vld [vmem:[%s363_s3 + $0x8] sm:$0xff] }
   0x4   :  { %v218_v9 = vld [vmem:[%s363_s3] sm:$0xff]  ;;  %v155_v10 = vld [vmem:[%s366_s5 + $0x78] sm:$0xff]  ;;  %v154_v11 = vld [vmem:[%s366_s5 + $0x70] sm:$0xff] }
   0x5   :  { %160 = vmatpush.msra.mxu2 %v155_v10  ;;  %v153_v12 = vld [vmem:[%s366_s5 + $0x68] sm:$0xff]  ;;  %v152_v13 = vld [vmem:[%s366_s5 + $0x60] sm:$0xff]  ;;  %v151_v14 = vld [vmem:[%s366_s5 + $0x58] sm:$0xff] }
   0x6   :  { %127 = vmatpush.bf16.msra.mxu1 %v224_v3  ;;  %v150_v15 = vld [vmem:[%s366_s5 + $0x50] sm:$0xff]  ;;  %v149_v16 = vld [vmem:[%s366_s5 + $0x48] sm:$0xff]  ;;  %v148_v17 = vld [vmem:[%s366_s5 + $0x40] sm:$0xff] }
   0x7   :  { %161 = vmatpush.msra.mxu2 %v154_v11  ;;  %v147_v18 = vld [vmem:[%s366_s5 + $0x38] sm:$0xff]  ;;  %v146_v19 = vld [vmem:[%s366_s5 + $0x30] sm:$0xff]  ;;  %v145_v20 = vld [vmem:[%s366_s5 + $0x28] sm:$0xff] }
   0x8   :  { %v144_v21 = vld [vmem:[%s366_s5 + $0x20] sm:$0xff]  ;;  %v143_v23 = vld [vmem:[%s366_s5 + $0x18] sm:$0xff]  ;;  %v142_v28 = vld [vmem:[%s366_s5 + $0x10] sm:$0xff] }
   0x9   :  { %162 = vmatpush.msra.mxu2 %v153_v12  ;;  %v226_v22 = vld [vmem:[%s364_s2] ss:$0 sm:$0xff]  ;;  %v141_v29 = vld [vmem:[%s366_s5 + $0x8] sm:$0xff] }
   0xa   :  { %128 = vmatpush.bf16.msra.mxu1 %v223_v4  ;;  %v140_v30 = vld [vmem:[%s366_s5] sm:$0xff] }
   0xb   :  { %163 = vmatpush.msra.mxu2 %v152_v13  ;;  %v227_v31 = vld [vmem:[%s365_s4] ss:$0 sm:$0xff] }
   0xc   :  { %v228_v36 = vld [vmem:[%s367_s6] ss:$0 sm:$0xff] }
   0xd   :  { %164 = vmatpush.msra.mxu2 %v151_v14 }
   0xe   :  { %129 = vmatpush.bf16.msra.mxu1 %v222_v5 }
   0xf   :  { %165 = vmatpush.msra.mxu2 %v150_v15 }
  0x11   :  { %166 = vmatpush.msra.mxu2 %v149_v16 }
  0x12   :  { %130 = vmatpush.bf16.msra.mxu1 %v221_v6 }
  0x13   :  { %167 = vmatpush.msra.mxu2 %v148_v17 }
  0x15   :  { %168 = vmatpush.msra.mxu2 %v147_v18 }
  0x16   :  { %131 = vmatpush.bf16.msra.mxu1 %v220_v7 }
  0x17   :  { %169 = vmatpush.msra.mxu2 %v146_v19 }
  0x19   :  { %170 = vmatpush.msra.mxu2 %v145_v20 }
  0x1a   :  { %132 = vmatpush.bf16.msra.mxu1 %v219_v8 }
  0x1b   :  { %171 = vmatpush.msra.mxu2 %v144_v21 }
  0x1d   :  { %172 = vmatpush.msra.mxu2 %v143_v23 }
  0x1e   :  { %133 = vmatpush.bf16.msra.mxu1 %v218_v9 }
  0x1f   :  { %173 = vmatpush.msra.mxu2 %v142_v28 }
  0x21   :  { %174 = vmatpush.msra.mxu2 %v141_v29 }
  0x23   :  { %175 = vmatpush.msra.mxu2 %v140_v30 }
  0x80   :  { %v53_v24 = vpop.f32.mrf.mxu0 }
  0x81   :  { %v54_v25 = vadd.f32 %v226_v22, %v53_v24 }
  0x83   :  { %v56_v26 = vmax.f32 %v54_v25, 0.0 }
  0x85   :  { %v57_v27 = vpack.c.bf16 %v56_v26, %v56_v26 }
  0x87   :  { %134 = vmatmul.bf16.vlgmr.msra.gmra.mxu1 %v57_v27 }
 0x104   :  { %v135_v32 = vpop.f32.mrf.mxu1 }
 0x105   :  { %v136_v33 = vadd.f32 %v227_v31, %v135_v32 }
 0x107   :  { %v139_v34 = vmax.f32 %v136_v33, 0.0 }
 0x109   :  { %176 = vmatmul.f32.vlgmr.msra.gmra.mxu2 %v139_v34 }
 0x10c   :  { %v137_v35 = vpop.f32.mrf.mxu1 }
 0x18c   :  { %v177_v37 = vpop.f32.mrf.mxu2 }
 0x18d   :  { %v178_v38 = vadd.f32 %v228_v36, %v177_v37 }
 0x18f   :  { %180 = vst.msk [vmem:[%s368_s7] sm:$0xff] %vm32_vm0, %v178_v38 }

</bundles_post_ra>
